<compile_context>
chip_gen: v7x
topology: tpu7x:2x2x1
jax: 0.10.0
libtpu: 0.0.40
codegen_flags: <defaults>
</compile_context>

<pallas_src>
import jax
import jax.numpy as jnp
from jax.experimental import pallas as pl
from jax.experimental.pallas import tpu as pltpu

_LANE = 128      # lane width (last-dim tiling unit)
_SUBLANE = 8     # sublane width (second-to-last-dim tiling unit)


def _round_up(n, m):
    return ((n + m - 1) // m) * m


def _logreg_kernel(x_ref, wt_ref, b_ref, o_ref):
    # [tm, inF] @ [inF, outF_p] on the MXU with f32 accumulation.
    z = jnp.dot(x_ref[...], wt_ref[...], preferred_element_type=jnp.float32)
    z = z + b_ref[...]                          # broadcast [1, outF_p] over rows
    # sigmoid(z) = 1 / (1 + exp(-z)): exp and the approximate reciprocal both
    # ride the EUP slot, so the epilogue avoids the multi-op f32 divide on VALU.
    o_ref[...] = pl.reciprocal(1.0 + jnp.exp(-z), approx=True)


def prepare_params(weight, bias):
    """One-time parameter prep (hoisted out of the per-step forward path).

    weight: [outF, inF] (PyTorch nn.Linear layout), bias: [outF].
    Returns (wT_padded [inF, outF_p], bias_padded [1, outF_p], outF) where
    outF_p is a multiple of 128, so output stores are lane-dense. The zero
    padding only produces extra sigmoid(0)=0.5 columns that get sliced off.
    """
    outF, inF = weight.shape
    outF_p = _round_up(outF, _LANE)
    wT = jnp.zeros((inF, outF_p), weight.dtype).at[:, :outF].set(weight.T)
    b2 = jnp.zeros((1, outF_p), bias.dtype).at[0, :outF].set(bias)
    return wT, b2, outF


def logreg_recom_forward(x, wT_p, b_p, outF, *, block_b=256):
    """x: [B, inF]; (wT_p, b_p, outF) from prepare_params. Returns [B, outF] f32."""
    B, inF = x.shape
    inF_w, outF_p = wT_p.shape
    assert inF == inF_w, "feature dim mismatch"

    # Batch tile: multiple of the 8-row sublane unit, at most block_b rows.
    tm = min(block_b, _round_up(B, _SUBLANE))
    B_p = _round_up(B, tm)
    if B_p != B:
        x = jnp.pad(x, ((0, B_p - B), (0, 0)))

    out_padded = pl.pallas_call(
        _logreg_kernel,
        out_shape=jax.ShapeDtypeStruct((B_p, outF_p), jnp.float32),
        grid_spec=pltpu.PrefetchScalarGridSpec(
            num_scalar_prefetch=0,
            grid=(B_p // tm,),
            in_specs=[
                # x: new tile per grid step -> double-buffered / pipelined.
                pl.BlockSpec((tm, inF), lambda i: (i, 0)),
                # weight / bias: constant block index -> stay VMEM-resident.
                pl.BlockSpec((inF, outF_p), lambda i: (0, 0)),
                pl.BlockSpec((1, outF_p), lambda i: (0, 0)),
            ],
            out_specs=pl.BlockSpec((tm, outF_p), lambda i: (i, 0)),
        ),
        compiler_params=pltpu.CompilerParams(
            # Independent batch tiles: megacore-shard across the 2 TCs on v7x.
            dimension_semantics=("parallel",),
        ),
    )(x, wT_p, b_p)

    # Strip batch / lane padding (layout plumbing only, negligible at output size).
    return out_padded[:B, :outF]


if __name__ == "__main__":
    # Small shapes consistent with the module: inFeatures=32, outFeatures=16, batch=8.
    B, IN_F, OUT_F = 8, 32, 16

    key = jax.random.PRNGKey(0)
    kx, kw, kb = jax.random.split(key, 3)

    x = jax.random.normal(kx, (B, IN_F), dtype=jnp.float32)
    # Deterministic parameter init (mimics nn.Linear's uniform(-1/sqrt(inF), 1/sqrt(inF))).
    bound = 1.0 / (IN_F ** 0.5)
    weight = jax.random.uniform(kw, (OUT_F, IN_F), minval=-bound, maxval=bound,
                                dtype=jnp.float32)
    bias = jax.random.uniform(kb, (OUT_F,), minval=-bound, maxval=bound,
                              dtype=jnp.float32)

    # One-time parameter prep (transpose + lane padding), then the hot forward.
    wT_p, b_p, out_f = prepare_params(weight, bias)
    out = logreg_recom_forward(x, wT_p, b_p, out_f)
    out = jax.block_until_ready(out)

    # Sanity check against plain-JAX reference (tolerance accounts for the
    # EUP approximate reciprocal used in the sigmoid epilogue).
    ref = jax.nn.sigmoid(x @ weight.T + bias)
    assert out.shape == (B, OUT_F)
    assert jnp.allclose(out, ref, atol=5e-3, rtol=1e-3)

    print("KERNEL_OK")
</pallas_src>

<mosaic_0001>
module attributes {stable_mosaic.version = 11 : i64} {
  func.func @_logreg_kernel(%arg0: i32, %arg1: memref<8x32xf32, #tpu.memory_space<vmem>>, %arg2: memref<32x128xf32, #tpu.memory_space<vmem>>, %arg3: memref<1x128xf32, #tpu.memory_space<vmem>>, %arg4: memref<8x128xf32, #tpu.memory_space<vmem>>) attributes {dimension_semantics = [#tpu.dimension_semantics<parallel>], iteration_bounds = array<i64: 1>, scalar_prefetch = 0 : i64, scratch_operands = 0 : i64, tpu.core_type = #tpu.core_type<tc>, window_params = [{transform_indices = @transform_0, window_bounds = array<i64: 8, 32>}, {pipeline_mode = #tpu.pipeline_mode<synchronous>, transform_indices = @transform_1, window_bounds = array<i64: 32, 128>}, {pipeline_mode = #tpu.pipeline_mode<synchronous>, transform_indices = @transform_2, window_bounds = array<i64: 1, 128>}, {transform_indices = @transform_3, window_bounds = array<i64: 8, 128>}]} {
    %c0 = arith.constant 0 : index
    %c0_0 = arith.constant 0 : index
    %0 = vector.load %arg1[%c0, %c0_0] : memref<8x32xf32, #tpu.memory_space<vmem>>, vector<8x32xf32>
    %c0_1 = arith.constant 0 : index
    %c0_2 = arith.constant 0 : index
    %1 = vector.load %arg2[%c0_1, %c0_2] : memref<32x128xf32, #tpu.memory_space<vmem>>, vector<32x128xf32>
    %cst = arith.constant dense<0.000000e+00> : vector<8x128xf32>
    %2 = tpu.matmul %0, %1, %cst {dimension_numbers = #tpu.dot_dimension_numbers<[1], [0], [0], [1], [0, 0, 1, 1], [], []>} : vector<8x32xf32>, vector<32x128xf32>, vector<8x128xf32> -> vector<8x128xf32>
    %c0_3 = arith.constant 0 : index
    %c0_4 = arith.constant 0 : index
    %3 = vector.load %arg3[%c0_3, %c0_4] : memref<1x128xf32, #tpu.memory_space<vmem>>, vector<1x128xf32>
    %4 = vector.broadcast %3 : vector<1x128xf32> to vector<8x128xf32>
    %5 = arith.addf %2, %4 : vector<8x128xf32>
    %cst_5 = arith.constant 0.000000e+00 : f32
    %6 = vector.broadcast %cst_5 : f32 to vector<8x128xf32>
    %7 = arith.subf %6, %5 : vector<8x128xf32>
    %8 = math.exp %7 : vector<8x128xf32>
    %cst_6 = arith.constant 1.000000e+00 : f32
    %9 = vector.broadcast %cst_6 : f32 to vector<8x128xf32>
    %10 = arith.addf %9, %8 : vector<8x128xf32>
    %11 = tpu.reciprocal %10 {approx = true} : vector<8x128xf32> -> vector<8x128xf32>
    %c0_7 = arith.constant 0 : index
    %c0_8 = arith.constant 0 : index
    %12 = vector.load %arg4[%c0_7, %c0_8] : memref<8x128xf32, #tpu.memory_space<vmem>>, vector<8x128xf32>
    tpu.vector_store %arg4[%c0_7, %c0_8], %11 {strides = array<i32>} : memref<8x128xf32, #tpu.memory_space<vmem>>, vector<8x128xf32>,
    return
  }
  func.func @transform_0(%arg0: i32) -> (i32, i32) {
    %c0_i32 = arith.constant 0 : i32
    %c0_i32_0 = arith.constant 0 : i32
    return %arg0, %c0_i32 : i32, i32
  }
  func.func @transform_1(%arg0: i32) -> (i32, i32) {
    %c0_i32 = arith.constant 0 : i32
    %c0_i32_0 = arith.constant 0 : i32
    %c0_i32_1 = arith.constant 0 : i32
    return %c0_i32, %c0_i32_0 : i32, i32
  }
  func.func @transform_2(%arg0: i32) -> (i32, i32) {
    %c0_i32 = arith.constant 0 : i32
    %c0_i32_0 = arith.constant 0 : i32
    %c0_i32_1 = arith.constant 0 : i32
    return %c0_i32, %c0_i32_0 : i32, i32
  }
  func.func @transform_3(%arg0: i32) -> (i32, i32) {
    %c0_i32 = arith.constant 0 : i32
    %c0_i32_0 = arith.constant 0 : i32
    return %arg0, %c0_i32 : i32, i32
  }
}

</mosaic_0001>

<bundles_post_ra>
// kernel: tpu_custom_call.1
= control target key start
LH: loop header
LB: loop body
LE: loop exit
PB: predicated region body
PF: predicated region fallthrough
CT: control target
= control target key end

     0   :  { %8 = vsyncpa [#allocation3], 0  ;;  %s331_s0 = inlined_call_operand.hbm [shape: f32[8,32], index: 0, kind: input, shape index: {}]   ;;  %s332_s1 = inlined_call_operand.hbm [shape: f32[32,128], index: 1, kind: input, shape index: {}]   ;;  %s333_s2 = inlined_call_operand.vmem [shape: f32[1,128], index: 2, kind: input, shape index: {}]   ;;  %s334_s3 = inlined_call_operand.hbm [shape: f32[8,128], index: 3, kind: output, shape index: {}]  }
   0x1   :  { %9 = vsyncpa [#allocation6], 0 }
   0x2   :  { %10 = vsyncpa [#allocation4], 0  ;;  %s257_s12 = smov [#allocation2]   ;;  %s258_s14 = smov [#allocation5]  }
   0x3   :  { %s17_s13 = sshll.u32 %s257_s12, 4  ;;  %s26_s15 = sshll.u32 %s258_s14, 4  ;;  %s18_s13 = int_to_ptr.vmem [resolvable:$true] %s17_s13  ;;  %s285_s15 = int_to_ptr.vmem [resolvable:$true] %s26_s15 }
   0x4   :  { %s185_s18 = scalar_lea.hbm %s331_s0, 128 }
   0x5   :  { %p186_p0 = scmp.ne.s32.totalorder %s331_s0, %s185_s18  ;;  %p189_p1 = scmp.lt.u32.totalorder %s185_s18, %s331_s0 }
   0x7   :  { %p191_p2 = pnand %p189_p1, %p186_p0 }
   0x9   :  { %194 = shalt.err (!%p191_p2)
}
   0xa   :  { %s195_s23 = scalar_lea.vmem %s18_s13, 128  ;;  %p200_p4 = scmp.lt.s32.totalorder %s18_s13, %s18_s13 }
   0xb   :  { %p196_p3 = scmp.ne.s32.totalorder %s18_s13, %s195_s23  ;;  %p201_p5 = scmp.lt.s32.totalorder %s195_s23, %s195_s23 }
   0xd   :  { %p202_p6 = por %p201_p5, %p200_p4 }
   0xf   :  { %p203_p7 = pnand %p202_p6, %p196_p3 }
  0x11   :  { %206 = shalt.err (!%p203_p7)
}
  0x12   :  { %20 = dma.hbm_to_vmem [thread:$0]  %s331_s0, 128, %s18_s13, [#allocation3]  }
  0x13   :  { %s207_s28 = scalar_lea.hbm %s332_s1, 512 }
  0x14   :  { %p208_p8 = scmp.ne.s32.totalorder %s332_s1, %s207_s28  ;;  %p211_p9 = scmp.lt.u32.totalorder %s207_s28, %s332_s1 }
  0x16   :  { %p213_p10 = pnand %p211_p9, %p208_p8 }
  0x18   :  { %216 = shalt.err (!%p213_p10)
}
  0x19   :  { %s217_s6 = scalar_lea.vmem %s285_s15, 512  ;;  %p222_p12 = scmp.lt.s32.totalorder %s285_s15, %s285_s15 }
  0x1a   :  { %p218_p11 = scmp.ne.s32.totalorder %s285_s15, %s217_s6  ;;  %p223_p13 = scmp.lt.s32.totalorder %s217_s6, %s217_s6 }
  0x1c   :  { %p224_p0 = por %p223_p13, %p222_p12 }
  0x1e   :  { %p225_p1 = pnand %p224_p0, %p218_p11 }
  0x20   :  { %228 = shalt.err (!%p225_p1)
}
  0x21   :  { %s259_s0 = smov 128   ;;  %s260_s7 = smov 8  }
  0x22   :  { %32 = dma.hbm_to_vmem [thread:$0]  %s332_s1, 512, %s285_s15, [#allocation6], %s259_s0, %s259_s0, %s260_s7  }
  0x23   :  { %251 = dma.done.wait [#allocation3], 128  }
  0x24   :  { %252 = vsyncadd [#allocation3], 4294967168 }
  0x25   :  { %253 = dma.done.wait [#allocation6], 512  }
  0x26   :  { %254 = vsyncadd [#allocation6], 4294966784  ;;  %v261_v0 = vmov 0.0|0.0   ;;  %vm262_vm0 = vmmov 0   ;;  %v263_v1 = vmov 0.0   ;;  %v42_v2 = vld [vmem:[#allocation5] sm:$0xff] }
  0x27   :  { %167 = vmatprep.subr.bf16.mxu0 %v261_v0  ;;  %164 = vmatprep.mubr.msk.f32.mxu0 %vm262_vm0, %v263_v1  ;;  %v43_v3 = vld [vmem:[#allocation5 + $0x8] sm:$0xff]  ;;  %v44_v4 = vld [vmem:[#allocation5 + $0x10] sm:$0xff]  ;;  %v45_v6 = vld [vmem:[#allocation5 + $0x18] sm:$0xff]  ;;  %vm53_vm1 = vcmask 261120   ;;  %s264_s11 = smov [#allocation7]  }
  0x28   :  { %v168_v5 = vpack.c.bf16 %v43_v3, %v42_v2  ;;  %v171_v7 = vpack.c.bf16 %v45_v6, %v44_v4  ;;  %v41_v8 = vld [vmem:[#allocation2] sm:$0xff]  ;;  %s139_s12 = sshll.u32 %s264_s11, 4  ;;  %s140_s12 = int_to_ptr.vmem [resolvable:$true] %s139_s12 }
  0x29   :  { %v149_v9 = vld [vmem:[%s333_s2] ss:$0 sm:$0xff]  ;;  %s229_s13 = scalar_lea.vmem %s140_s12, 128  ;;  %p234_p3 = scmp.lt.s32.totalorder %s140_s12, %s140_s12 }
  0x2a   :  { %169 = vmatpush3.bf16.msra.mxu0 %v168_v5  ;;  %p230_p2 = scmp.ne.s32.totalorder %s140_s12, %s229_s13  ;;  %p235_p4 = scmp.lt.s32.totalorder %s229_s13, %s229_s13 }
  0x2b   :  { %170 = vmatprep.subr.bf16.mxu0 %v261_v0 }
  0x2c   :  { %p236_p5 = por %p235_p4, %p234_p3 }
  0x2e   :  { %172 = vmatpush3.bf16.msra.mxu0 %v171_v7  ;;  %p237_p6 = pnand %p236_p5, %p230_p2 }
  0x31   :  { %165 = vmatmul.mubr.msk.f32.vlgmr.msra.gmra.mrb[0].mxu0 %vm53_vm1, %v41_v8 }
 0x104   :  { %v123_v10 = vpop.f32.mrb[0].mxu0 }
 0x105   :  { %v124_v11 = vadd.f32 %v149_v9, %v123_v10  ;;  %v166_v12 = vpop.f32.mrb[1].mxu0 }
 0x107   :  { %v127_v13 = vsub.f32 0.0, %v124_v11 }
 0x109   :  { %v128_v14 = vmul.f32 1.442695, %v127_v13 }
 0x10b   :  { %181 = vpow2.f32 %v128_v14 }
 0x115   :  { %v182_v15 = vpop.eup %181 }
 0x116   :  { %v130_v16 = vadd.f32 1.0, %v182_v15 }
 0x118   :  { %183 = vrcp.f32 %v130_v16 }
 0x122   :  { %v184_v17 = vpop.eup %183 }
 0x123   :  { %132 = vst [vmem:[#allocation7] sm:$0xff] %v184_v17 }
 0x124   :  { %240 = shalt.err (!%p237_p6)
}
 0x125   :  { %s241_s15 = scalar_lea.hbm %s334_s3, 128 }
 0x126   :  { %p242_p7 = scmp.ne.s32.totalorder %s334_s3, %s241_s15  ;;  %p245_p8 = scmp.lt.u32.totalorder %s241_s15, %s334_s3 }
 0x128   :  { %p247_p9 = pnand %p245_p8, %p242_p7 }
 0x12a   :  { %250 = shalt.err (!%p247_p9)
}
 0x12b   :  { %142 = dma.vmem_to_hbm [thread:$0]  %s140_s12, 128, %s334_s3, [#allocation4]  }
 0x12c   :  { %255 = dma.done.wait [#allocation4], 128  }
 0x12d   :  { %256 = vsyncadd [#allocation4], 4294967168 }
 0x12e   :  { %146 = vsyncpa [#allocation3], 1 }
 0x12f   :  { %147 = vsyncpa [#allocation6], 1 }
 0x130   :  { %148 = vsyncpa [#allocation4], 1 }

</bundles_post_ra>
